<compile_context>
chip_gen: v5e
topology: v5e:2x2
jax: 0.10.0
libtpu: 0.0.40
codegen_flags: <defaults>
</compile_context>

<pallas_src>
import jax
import jax.numpy as jnp
from jax import lax
from jax.experimental import pallas as pl
from jax.experimental.pallas import tpu as pltpu


def _mode_kernel(hr_ref, ge_ref, hc_ref, o_ref):
    # hr/ge/hc: (tile, D) tiles in native dtype; o: (1, tile) f32 (lane-dense).
    hr = hr_ref[...].astype(jnp.float32)
    ge = ge_ref[...].astype(jnp.float32)
    hc = hc_ref[...].astype(jnp.float32)
    diff = hr * ge - hc                       # (tile, D)
    sq = diff * diff                          # (tile, D)
    # Sum over D via an MXU contraction with a ones row-vector: the result lands
    # directly in lane-dense (1, tile) layout, avoiding a sublane->lane relayout
    # and masked (tile, 1) stores. HIGHEST precision keeps full f32 accuracy.
    ones_row = jnp.ones((1, sq.shape[-1]), dtype=jnp.float32)
    ssq = lax.dot_general(
        ones_row, sq,
        dimension_numbers=(((1,), (1,)), ((), ())),
        preferred_element_type=jnp.float32,
        precision=lax.Precision.HIGHEST,
    )                                         # (1, tile)
    # Kernel is HBM-bandwidth bound; the sqrt is one cheap EUP op per edge.
    o_ref[...] = jnp.sqrt(ssq)


def mode_forward(h, g, edge_idx, edge_type, *, tile_e=1024):
    """Pallas implementation of ModE.forward: ||h[row]*g[type] - h[col]||_2."""
    row = edge_idx[0].astype(jnp.int32)
    col = edge_idx[1].astype(jnp.int32)
    rel = edge_type.astype(jnp.int32)

    E = row.shape[0]
    D = h.shape[1]
    itemsize = jnp.dtype(h.dtype).itemsize

    # VMEM budget for the double-buffered pipeline: 3 inputs x 2 buffers per
    # edge row plus the (tiny) f32 output row. Stay well under the 32 MiB scoped
    # default (also comfortable on v7x's 64 MiB physical VMEM).
    budget_bytes = 16 * 1024 * 1024
    per_row_bytes = 2 * (3 * D * itemsize + 4)
    max_tile = max(128, budget_bytes // max(per_row_bytes, 1))
    tile = min(int(tile_e), int(max_tile))
    # Multiple of 128 keeps the output lane axis full-width (unmasked stores);
    # don't tile far past E for tiny problems.
    tile = min(tile, -(-E // 128) * 128)
    tile = max(128, (tile // 128) * 128)

    num_tiles = -(-E // tile)
    e_pad = num_tiles * tile

    # Pad only the cheap int32 index vectors (never the gathered (E, D) data).
    if e_pad != E:
        row = jnp.pad(row, (0, e_pad - E))
        col = jnp.pad(col, (0, e_pad - E))
        rel = jnp.pad(rel, (0, e_pad - E))

    # Glue: data-dependent row gathers stay in XLA, in native dtype.
    hr = jnp.take(h, row, axis=0)    # (e_pad, D)
    hc = jnp.take(h, col, axis=0)    # (e_pad, D)
    ge = jnp.take(g, rel, axis=0)    # (e_pad, D)

    # TODO(synk): for large D (>= ~256) move the gather in-kernel (scalar-
    # prefetched indices + manual make_async_copy row DMAs) to avoid
    # materialising the three (E, D) gathered arrays in HBM (~2x traffic).

    out = pl.pallas_call(
        _mode_kernel,
        out_shape=jax.ShapeDtypeStruct((1, e_pad), jnp.float32),
        grid_spec=pltpu.PrefetchScalarGridSpec(
            num_scalar_prefetch=0,
            grid=(num_tiles,),
            in_specs=[
                pl.BlockSpec((tile, D), lambda i: (i, 0)),  # h[row]
                pl.BlockSpec((tile, D), lambda i: (i, 0)),  # g[edge_type]
                pl.BlockSpec((tile, D), lambda i: (i, 0)),  # h[col]
            ],
            out_specs=pl.BlockSpec((1, tile), lambda i: (0, i)),
        ),
        compiler_params=pltpu.CompilerParams(
            dimension_semantics=("parallel",),
            vmem_limit_bytes=32 * 1024 * 1024,
        ),
    )(hr, ge, hc)

    return out[0, :E]


def _mode_reference(h, g, edge_idx, edge_type):
    row, col = edge_idx[0], edge_idx[1]
    diff = h[row, :] * g[edge_type, :] - h[col, :]
    return jnp.sqrt(jnp.sum(diff * diff, axis=-1))


if __name__ == "__main__":
    # Small, deterministic synthetic inputs consistent with the module:
    #   N nodes, R relation types, D-dim embeddings, E edges.
    N, R, D, E = 16, 4, 32, 8

    key = jax.random.PRNGKey(0)
    k_h, k_g, k_row, k_col, k_type = jax.random.split(key, 5)

    h = jax.random.normal(k_h, (N, D), dtype=jnp.float32)
    g = jax.random.normal(k_g, (R, D), dtype=jnp.float32)
    row = jax.random.randint(k_row, (E,), 0, N, dtype=jnp.int32)
    col = jax.random.randint(k_col, (E,), 0, N, dtype=jnp.int32)
    edge_idx = jnp.stack([row, col], axis=0)           # (2, E)
    edge_type = jax.random.randint(k_type, (E,), 0, R, dtype=jnp.int32)

    d_norm = jax.block_until_ready(mode_forward(h, g, edge_idx, edge_type))

    d_ref = _mode_reference(h, g, edge_idx, edge_type)
    assert d_norm.shape == (E,)
    assert jnp.allclose(d_norm, d_ref, rtol=1e-5, atol=1e-5), (
        float(jnp.max(jnp.abs(d_norm - d_ref))))

    print("KERNEL_OK")
</pallas_src>

<mosaic_0001>
module attributes {stable_mosaic.version = 11 : i64} {
  func.func @_mode_kernel(%arg0: i32, %arg1: memref<128x32xf32, #tpu.memory_space<vmem>>, %arg2: memref<128x32xf32, #tpu.memory_space<vmem>>, %arg3: memref<128x32xf32, #tpu.memory_space<vmem>>, %arg4: memref<1x128xf32, #tpu.memory_space<vmem>>) attributes {dimension_semantics = [#tpu.dimension_semantics<parallel>], iteration_bounds = array<i64: 1>, scalar_prefetch = 0 : i64, scratch_operands = 0 : i64, tpu.core_type = #tpu.core_type<tc>, window_params = [{transform_indices = @transform_0, window_bounds = array<i64: 128, 32>}, {transform_indices = @transform_1, window_bounds = array<i64: 128, 32>}, {transform_indices = @transform_2, window_bounds = array<i64: 128, 32>}, {transform_indices = @transform_3, window_bounds = array<i64: 1, 128>}]} {
    %c0 = arith.constant 0 : index
    %c0_0 = arith.constant 0 : index
    %0 = vector.load %arg1[%c0, %c0_0] : memref<128x32xf32, #tpu.memory_space<vmem>>, vector<128x32xf32>
    %c0_1 = arith.constant 0 : index
    %c0_2 = arith.constant 0 : index
    %1 = vector.load %arg2[%c0_1, %c0_2] : memref<128x32xf32, #tpu.memory_space<vmem>>, vector<128x32xf32>
    %c0_3 = arith.constant 0 : index
    %c0_4 = arith.constant 0 : index
    %2 = vector.load %arg3[%c0_3, %c0_4] : memref<128x32xf32, #tpu.memory_space<vmem>>, vector<128x32xf32>
    %3 = arith.mulf %0, %1 : vector<128x32xf32>
    %4 = arith.subf %3, %2 : vector<128x32xf32>
    %5 = arith.mulf %4, %4 : vector<128x32xf32>
    %cst = arith.constant 1.000000e+00 : f32
    %6 = vector.broadcast %cst : f32 to vector<1x32xf32>
    %cst_5 = arith.constant dense<0.000000e+00> : vector<1x128xf32>
    %7 = tpu.matmul %6, %5, %cst_5 {dimension_numbers = #tpu.dot_dimension_numbers<[1], [1], [0], [0], [0, 0, 1, 0], [], []>, precision = #tpu.contract_precision<fp32>} : vector<1x32xf32>, vector<128x32xf32>, vector<1x128xf32> -> vector<1x128xf32>
    %8 = math.sqrt %7 : vector<1x128xf32>
    %c0_6 = arith.constant 0 : index
    %c0_7 = arith.constant 0 : index
    %9 = vector.load %arg4[%c0_6, %c0_7] : memref<1x128xf32, #tpu.memory_space<vmem>>, vector<1x128xf32>
    tpu.vector_store %arg4[%c0_6, %c0_7], %8 {strides = array<i32>} : memref<1x128xf32, #tpu.memory_space<vmem>>, vector<1x128xf32>,
    return
  }
  func.func @transform_0(%arg0: i32) -> (i32, i32) {
    %c0_i32 = arith.constant 0 : i32
    %c0_i32_0 = arith.constant 0 : i32
    return %arg0, %c0_i32 : i32, i32
  }
  func.func @transform_1(%arg0: i32) -> (i32, i32) {
    %c0_i32 = arith.constant 0 : i32
    %c0_i32_0 = arith.constant 0 : i32
    return %arg0, %c0_i32 : i32, i32
  }
  func.func @transform_2(%arg0: i32) -> (i32, i32) {
    %c0_i32 = arith.constant 0 : i32
    %c0_i32_0 = arith.constant 0 : i32
    return %arg0, %c0_i32 : i32, i32
  }
  func.func @transform_3(%arg0: i32) -> (i32, i32) {
    %c0_i32 = arith.constant 0 : i32
    %c0_i32_0 = arith.constant 0 : i32
    return %c0_i32, %arg0 : i32, i32
  }
}

</mosaic_0001>

<bundles_post_ra>
// kernel: tpu_custom_call.1
= control target key start
LH: loop header
LB: loop body
LE: loop exit
PB: predicated region body
PF: predicated region fallthrough
CT: control target
= control target key end

     0   :  { %vm111_vm0 = vcmask 261120   ;;  %s984_s0 = inlined_call_operand.vmem [shape: f32[128,32], index: 0, kind: input, shape index: {}]   ;;  %s985_s1 = inlined_call_operand.vmem [shape: f32[128,32], index: 1, kind: input, shape index: {}]   ;;  %s986_s2 = inlined_call_operand.vmem [shape: f32[128,32], index: 2, kind: input, shape index: {}]   ;;  %s987_s3 = inlined_call_operand.hbm [shape: f32[1,128], index: 3, kind: output, shape index: {}]  }
   0x1   :  { %v30_v0 = vld [vmem:[%s984_s0 + $0x78] sm:$0xff]  ;;  %v29_v4 = vld [vmem:[%s984_s0 + $0x70] sm:$0xff]  ;;  %v28_v8 = vld [vmem:[%s984_s0 + $0x68] sm:$0xff] }
   0x2   :  { %v46_v1 = vld [vmem:[%s985_s1 + $0x78] sm:$0xff]  ;;  %v45_v5 = vld [vmem:[%s985_s1 + $0x70] sm:$0xff]  ;;  %v44_v9 = vld [vmem:[%s985_s1 + $0x68] sm:$0xff] }
   0x3   :  { %v62_v2 = vld [vmem:[%s986_s2 + $0x78] sm:$0xff]  ;;  %v78_v3 = vmul.f32 %v46_v1, %v30_v0  ;;  %v61_v6 = vld [vmem:[%s986_s2 + $0x70] sm:$0xff]  ;;  %v77_v7 = vmul.f32 %v45_v5, %v29_v4  ;;  %v60_v10 = vld [vmem:[%s986_s2 + $0x68] sm:$0xff]  ;;  %v76_v12 = vmul.f32 %v44_v9, %v28_v8 }
   0x4   :  { %v27_v13 = vld [vmem:[%s984_s0 + $0x60] sm:$0xff]  ;;  %v26_v18 = vld [vmem:[%s984_s0 + $0x58] sm:$0xff]  ;;  %v25_v24 = vld [vmem:[%s984_s0 + $0x50] sm:$0xff] }
   0x5   :  { %v94_v11 = vsub.f32 %v78_v3, %v62_v2  ;;  %v43_v14 = vld [vmem:[%s985_s1 + $0x60] sm:$0xff]  ;;  %v93_v16 = vsub.f32 %v77_v7, %v61_v6  ;;  %v42_v19 = vld [vmem:[%s985_s1 + $0x58] sm:$0xff]  ;;  %v92_v22 = vsub.f32 %v76_v12, %v60_v10  ;;  %v41_v25 = vld [vmem:[%s985_s1 + $0x50] sm:$0xff] }
   0x6   :  { %v59_v15 = vld [vmem:[%s986_s2 + $0x60] sm:$0xff]  ;;  %v75_v17 = vmul.f32 %v43_v14, %v27_v13  ;;  %v58_v20 = vld [vmem:[%s986_s2 + $0x58] sm:$0xff]  ;;  %v74_v23 = vmul.f32 %v42_v19, %v26_v18  ;;  %v57_v26 = vld [vmem:[%s986_s2 + $0x50] sm:$0xff]  ;;  %v73_v29 = vmul.f32 %v41_v25, %v25_v24 }
   0x7   :  { %v110_v21 = vmul.f32 %v94_v11, %v94_v11  ;;  %v109_v27 = vmul.f32 %v93_v16, %v93_v16  ;;  %v24_v30 = vld [vmem:[%s984_s0 + $0x48] sm:$0xff]  ;;  %v108_v34 = vmul.f32 %v92_v22, %v92_v22 }
   0x8   :  { %v91_v28 = vsub.f32 %v75_v17, %v59_v15  ;;  %v40_v31 = vld [vmem:[%s985_s1 + $0x48] sm:$0xff]  ;;  %v90_v35 = vsub.f32 %v74_v23, %v58_v20  ;;  %v89_v40 = vsub.f32 %v73_v29, %v57_v26 }
   0x9   :  { %v56_v32 = vld [vmem:[%s986_s2 + $0x48] sm:$0xff]  ;;  %v161_v33 = vsel %vm111_vm0, %v110_v21, 0  ;;  %v72_v36 = vmul.f32 %v40_v31, %v24_v30  ;;  %v158_v38 = vsel %vm111_vm0, %v109_v27, 0  ;;  %v155_v42 = vsel %vm111_vm0, %v108_v34, 0 }
   0xa   :  { %v654_v37 = vand.u32 4294901760, %v161_v33  ;;  %v107_v39 = vmul.f32 %v91_v28, %v91_v28  ;;  %v657_v41 = vand.u32 4294901760, %v158_v38  ;;  %v106_v43 = vmul.f32 %v90_v35, %v90_v35 }
   0xb   :  { %v88_v44 = vsub.f32 %v72_v36, %v56_v32  ;;  %v664_v46 = vand.u32 4294901760, %v155_v42  ;;  %v105_v48 = vmul.f32 %v89_v40, %v89_v40 }
   0xc   :  { %164 = vmatpush.xpose.msra.mxu0 %v654_v37  ;;  %v662_v45 = vsub.f32 %v161_v33, %v654_v37  ;;  %v152_v47 = vsel %vm111_vm0, %v107_v39, 0  ;;  %360 = vmatpush.xpose.msra.mxu3 %v654_v37  ;;  %v669_v49 = vsub.f32 %v158_v38, %v657_v41  ;;  %v149_v51 = vsel %vm111_vm0, %v106_v43, 0 }
   0xd   :  { %v671_v50 = vand.u32 4294901760, %v152_v47 }
   0xe   :  { %8 = vsyncpa [#allocation3], 0  ;;  %v206_v52 = vand.u32 4294901760, %v662_v45  ;;  %v676_v53 = vsub.f32 %v155_v42, %v664_v46  ;;  %v23_v54 = vld [vmem:[%s984_s0 + $0x40] sm:$0xff]  ;;  %307 = vmatpush.xpose.msra.mxu2 %v662_v45  ;;  %v212_v56 = vand.u32 4294901760, %v669_v49  ;;  %v686_v57 = vand.u32 4294901760, %v149_v51 }
   0xf   :  { %v39_v55 = vld [vmem:[%s985_s1 + $0x40] sm:$0xff]  ;;  %v104_v58 = vmul.f32 %v88_v44, %v88_v44  ;;  %v694_v61 = vsub.f32 %v152_v47, %v671_v50  ;;  %v146_v62 = vsel %vm111_vm0, %v105_v48, 0  ;;  %v22_v2 = vld [vmem:[%s984_s0 + $0x38] sm:$0xff]  ;;  %v21_v5 = vld [vmem:[%s984_s0 + $0x30] sm:$0xff]  ;;  %s524_s28 = sshll.u32 %s987_s3, 4  ;;  %s525_s28 = int_to_ptr.hbm [resolvable:$true] %s524_s28 }
  0x10   :  { %166 = vmatpush.xpose.msra.mxu0 %v657_v41  ;;  %v207_v59 = vsub.f32 %v662_v45, %v206_v52  ;;  %v218_v60 = vand.u32 4294901760, %v676_v53  ;;  %v55_v63 = vld [vmem:[%s986_s2 + $0x40] sm:$0xff]  ;;  %362 = vmatpush.xpose.msra.mxu3 %v657_v41  ;;  %v213_v0 = vsub.f32 %v669_v49, %v212_v56  ;;  %v71_v1 = vmul.f32 %v39_v55, %v23_v54  ;;  %v38_v3 = vld [vmem:[%s985_s1 + $0x38] sm:$0xff]  ;;  %v37_v6 = vld [vmem:[%s985_s1 + $0x30] sm:$0xff] }
  0x11   :  { %v717_v7 = vand.u32 4294901760, %v146_v62  ;;  %v720_v8 = vsub.f32 %v149_v51, %v686_v57  ;;  %v143_v9 = vsel %vm111_vm0, %v104_v58, 0  ;;  %v54_v11 = vld [vmem:[%s986_s2 + $0x38] sm:$0xff]  ;;  %v224_v14 = vand.u32 4294901760, %v694_v61  ;;  %v20_v18 = vld [vmem:[%s984_s0 + $0x28] sm:$0xff]  ;;  %v53_v21 = vld [vmem:[%s986_s2 + $0x30] sm:$0xff] }
  0x12   :  { %v208_v4 = vand.u32 4294901760, %v207_v59  ;;  %310 = vmatpush.xpose.msra.mxu2 %v669_v49  ;;  %v87_v10 = vsub.f32 %v71_v1, %v55_v63  ;;  %v214_v12 = vand.u32 4294901760, %v213_v0  ;;  %v219_v13 = vsub.f32 %v676_v53, %v218_v60  ;;  %v36_v19 = vld [vmem:[%s985_s1 + $0x28] sm:$0xff]  ;;  %v19_v28 = vld [vmem:[%s984_s0 + $0x20] sm:$0xff]  ;;  %v18_v48 = vld [vmem:[%s984_s0 + $0x18] sm:$0xff] }
  0x13   :  { %v70_v15 = vmul.f32 %v38_v3, %v22_v2  ;;  %v69_v17 = vmul.f32 %v37_v6, %v21_v5  ;;  %v742_v22 = vand.u32 4294901760, %v143_v9  ;;  %v745_v23 = vsub.f32 %v146_v62, %v717_v7  ;;  %v35_v29 = vld [vmem:[%s985_s1 + $0x20] sm:$0xff]  ;;  %v52_v33 = vld [vmem:[%s986_s2 + $0x28] sm:$0xff]  ;;  %v34_v51 = vld [vmem:[%s985_s1 + $0x18] sm:$0xff] }
  0x14   :  { %209 = vmatpush.xpose.msra.mxu1 %v208_v4  ;;  %168 = vmatpush.xpose.msra.mxu0 %v664_v46  ;;  %v103_v16 = vmul.f32 %v87_v10, %v87_v10  ;;  %v220_v24 = vand.u32 4294901760, %v219_v13  ;;  %v225_v25 = vsub.f32 %v694_v61, %v224_v14  ;;  %v230_v26 = vand.u32 4294901760, %v720_v8  ;;  %v51_v43 = vld [vmem:[%s986_s2 + $0x20] sm:$0xff]  ;;  %v50_v3 = vld [vmem:[%s986_s2 + $0x18] sm:$0xff]  ;;  %v17_v4 = vld [vmem:[%s984_s0 + $0x10] sm:$0xff] }
  0x15   :  { %364 = vmatpush.xpose.msra.mxu3 %v664_v46  ;;  %v86_v20 = vsub.f32 %v70_v15, %v54_v11  ;;  %v68_v27 = vmul.f32 %v36_v19, %v20_v18  ;;  %v85_v32 = vsub.f32 %v69_v17, %v53_v21  ;;  %v236_v34 = vand.u32 4294901760, %v745_v23  ;;  %v33_v5 = vld [vmem:[%s985_s1 + $0x10] sm:$0xff]  ;;  %v16_v19 = vld [vmem:[%s984_s0 + $0x8] sm:$0xff] }
  0x16   :  { %313 = vmatpush.xpose.msra.mxu2 %v676_v53  ;;  %v140_v30 = vsel %vm111_vm0, %v103_v16, 0  ;;  %v766_v35 = vsub.f32 %v143_v9, %v742_v22  ;;  %v67_v36 = vmul.f32 %v35_v29, %v19_v28  ;;  %v226_v38 = vand.u32 4294901760, %v225_v25  ;;  %v49_v18 = vld [vmem:[%s986_s2 + $0x10] sm:$0xff] }
  0x17   :  { %v102_v31 = vmul.f32 %v86_v20, %v86_v20  ;;  %v231_v39 = vsub.f32 %v720_v8, %v230_v26  ;;  %v772_v40 = vand.u32 4294901760, %v140_v30  ;;  %v84_v42 = vsub.f32 %v68_v27, %v52_v33  ;;  %v32_v20 = vld [vmem:[%s985_s1 + $0x8] sm:$0xff] }
  0x18   :  { %215 = vmatpush.xpose.msra.mxu1 %v214_v12  ;;  %170 = vmatpush.xpose.msra.mxu0 %v671_v50  ;;  %v101_v47 = vmul.f32 %v85_v32, %v85_v32  ;;  %v237_v54 = vsub.f32 %v745_v23, %v236_v34  ;;  %v242_v55 = vand.u32 4294901760, %v766_v35  ;;  %v83_v58 = vsub.f32 %v67_v36, %v51_v43  ;;  %v48_v33 = vld [vmem:[%s986_s2 + $0x8] sm:$0xff]  ;;  %v15_v36 = vld [vmem:[%s984_s0] sm:$0xff] }
  0x19   :  { %366 = vmatpush.xpose.msra.mxu3 %v671_v50  ;;  %v137_v44 = vsel %vm111_vm0, %v102_v31, 0  ;;  %v232_v59 = vand.u32 4294901760, %v231_v39  ;;  %v794_v63 = vsub.f32 %v140_v30, %v772_v40  ;;  %v100_v0 = vmul.f32 %v84_v42, %v84_v42 }
  0x1a   :  { %316 = vmatpush.xpose.msra.mxu2 %v694_v61  ;;  %v791_v62 = vand.u32 4294901760, %v137_v44  ;;  %v134_v1 = vsel %vm111_vm0, %v101_v47, 0  ;;  %v66_v2 = vmul.f32 %v34_v51, %v18_v48  ;;  %v238_v6 = vand.u32 4294901760, %v237_v54 }
  0x1b   :  { %v243_v9 = vsub.f32 %v766_v35, %v242_v55  ;;  %v99_v10 = vmul.f32 %v83_v58, %v83_v58  ;;  %v248_v11 = vand.u32 4294901760, %v794_v63  ;;  %v813_v12 = vand.u32 4294901760, %v134_v1 }
  0x1c   :  { %221 = vmatpush.xpose.msra.mxu1 %v220_v24  ;;  %172 = vmatpush.xpose.msra.mxu0 %v686_v57  ;;  %v816_v13 = vsub.f32 %v137_v44, %v791_v62  ;;  %v131_v15 = vsel %vm111_vm0, %v100_v0, 0  ;;  %v82_v16 = vsub.f32 %v66_v2, %v50_v3  ;;  %v65_v17 = vmul.f32 %v33_v5, %v17_v4 }
  0x1d   :  { %368 = vmatpush.xpose.msra.mxu3 %v686_v57  ;;  %v244_v21 = vand.u32 4294901760, %v243_v9  ;;  %v830_v24 = vand.u32 4294901760, %v131_v15  ;;  %v249_v25 = vsub.f32 %v794_v63, %v248_v11  ;;  %v838_v28 = vsub.f32 %v134_v1, %v813_v12 }
  0x1e   :  { %319 = vmatpush.xpose.msra.mxu2 %v720_v8  ;;  %v254_v27 = vand.u32 4294901760, %v816_v13  ;;  %v128_v29 = vsel %vm111_vm0, %v99_v10, 0  ;;  %v98_v30 = vmul.f32 %v82_v16, %v82_v16  ;;  %v81_v31 = vsub.f32 %v65_v17, %v49_v18 }
  0x1f   :  { %v64_v32 = vmul.f32 %v32_v20, %v16_v19  ;;  %v852_v39 = vand.u32 4294901760, %v128_v29  ;;  %v250_v42 = vand.u32 4294901760, %v249_v25  ;;  %v260_v44 = vand.u32 4294901760, %v838_v28 }
  0x20   :  { %227 = vmatpush.xpose.msra.mxu1 %v226_v38  ;;  %174 = vmatpush.xpose.msra.mxu0 %v717_v7  ;;  %v31_v38 = vld [vmem:[%s985_s1] sm:$0xff]  ;;  %v255_v43 = vsub.f32 %v816_v13, %v254_v27  ;;  %v860_v47 = vsub.f32 %v131_v15, %v830_v24  ;;  %v125_v48 = vsel %vm111_vm0, %v98_v30, 0  ;;  %v97_v51 = vmul.f32 %v81_v31, %v81_v31 }
  0x21   :  { %370 = vmatpush.xpose.msra.mxu3 %v717_v7  ;;  %v80_v54 = vsub.f32 %v64_v32, %v48_v33  ;;  %v63_v58 = vmul.f32 %v31_v38, %v15_v36  ;;  %v869_v0 = vsub.f32 %v128_v29, %v852_v39  ;;  %v261_v2 = vsub.f32 %v838_v28, %v260_v44 }
  0x22   :  { %322 = vmatpush.xpose.msra.mxu2 %v745_v23  ;;  %v256_v1 = vand.u32 4294901760, %v255_v43  ;;  %v266_v3 = vand.u32 4294901760, %v860_v47  ;;  %v876_v4 = vand.u32 4294901760, %v125_v48  ;;  %v122_v5 = vsel %vm111_vm0, %v97_v51, 0 }
  0x23   :  { %v272_v10 = vand.u32 4294901760, %v869_v0  ;;  %v262_v15 = vand.u32 4294901760, %v261_v2  ;;  %v886_v17 = vand.u32 4294901760, %v122_v5  ;;  %v567_v45 = vmov 0  }
  0x24   :  { %233 = vmatpush.xpose.msra.mxu1 %v232_v59  ;;  %176 = vmatpush.xpose.msra.mxu0 %v742_v22  ;;  %v47_v59 = vld [vmem:[%s986_s2] sm:$0xff]  ;;  %v267_v16 = vsub.f32 %v860_v47, %v266_v3  ;;  %v889_v18 = vsub.f32 %v125_v48, %v876_v4  ;;  %v113_v49 = vsel %vm111_vm0, 1.0, %v567_v45  ;;  %s569_s2 = smov [#allocation2]  }
  0x25   :  { %372 = vmatpush.xpose.msra.mxu3 %v742_v22  ;;  %v79_v9 = vsub.f32 %v63_v58, %v47_v59  ;;  %v902_v31 = vsub.f32 %v122_v5, %v886_v17  ;;  %s522_s25 = sshll.u32 %s569_s2, 4  ;;  %s523_s25 = int_to_ptr.vmem [resolvable:$true] %s522_s25 }
  0x26   :  { %325 = vmatpush.xpose.msra.mxu2 %v766_v35  ;;  %v268_v25 = vand.u32 4294901760, %v267_v16  ;;  %v278_v29 = vand.u32 4294901760, %v889_v18 }
  0x27   :  { %v95_v20 = vmul.f32 %v79_v9, %v79_v9  ;;  %v284_v38 = vand.u32 4294901760, %v902_v31 }
  0x28   :  { %239 = vmatpush.xpose.msra.mxu1 %v238_v6  ;;  %178 = vmatpush.xpose.msra.mxu0 %v772_v40  ;;  %v96_v6 = vmul.f32 %v80_v54, %v80_v54  ;;  %v279_v36 = vsub.f32 %v889_v18, %v278_v29 }
  0x29   :  { %374 = vmatpush.xpose.msra.mxu3 %v772_v40  ;;  %v116_v32 = vsel %vm111_vm0, %v95_v20, 0  ;;  %v285_v51 = vsub.f32 %v902_v31, %v284_v38 }
  0x2a   :  { %328 = vmatpush.xpose.msra.mxu2 %v794_v63  ;;  %v119_v19 = vsel %vm111_vm0, %v96_v6, 0  ;;  %v280_v48 = vand.u32 4294901760, %v279_v36 }
  0x2b   :  { %v899_v30 = vand.u32 4294901760, %v119_v19  ;;  %v286_v59 = vand.u32 4294901760, %v285_v51 }
  0x2c   :  { %245 = vmatpush.xpose.msra.mxu1 %v244_v21  ;;  %180 = vmatpush.xpose.msra.mxu0 %v791_v62  ;;  %v273_v21 = vsub.f32 %v869_v0, %v272_v10 }
  0x2d   :  { %376 = vmatpush.xpose.msra.mxu3 %v791_v62  ;;  %v915_v43 = vsub.f32 %v119_v19, %v899_v30 }
  0x2e   :  { %331 = vmatpush.xpose.msra.mxu2 %v816_v13  ;;  %v274_v33 = vand.u32 4294901760, %v273_v21 }
  0x2f   :  { %v290_v54 = vand.u32 4294901760, %v915_v43 }
  0x30   :  { %251 = vmatpush.xpose.msra.mxu1 %v250_v42  ;;  %182 = vmatpush.xpose.msra.mxu0 %v813_v12  ;;  %v912_v42 = vand.u32 4294901760, %v116_v32 }
  0x31   :  { %378 = vmatpush.xpose.msra.mxu3 %v813_v12 }
  0x32   :  { %334 = vmatpush.xpose.msra.mxu2 %v838_v28  ;;  %v295_v58 = vsub.f32 %v116_v32, %v912_v42 }
  0x34   :  { %257 = vmatpush.xpose.msra.mxu1 %v256_v1  ;;  %184 = vmatpush.xpose.msra.mxu0 %v830_v24  ;;  %v291_v1 = vsub.f32 %v915_v43, %v290_v54  ;;  %v296_v2 = vand.u32 4294901760, %v295_v58 }
  0x35   :  { %380 = vmatpush.xpose.msra.mxu3 %v830_v24 }
  0x36   :  { %337 = vmatpush.xpose.msra.mxu2 %v860_v47  ;;  %v292_v5 = vand.u32 4294901760, %v291_v1  ;;  %v297_v6 = vsub.f32 %v295_v58, %v296_v2 }
  0x38   :  { %263 = vmatpush.xpose.msra.mxu1 %v262_v15  ;;  %186 = vmatpush.xpose.msra.mxu0 %v852_v39  ;;  %v298_v9 = vand.u32 4294901760, %v297_v6 }
  0x39   :  { %382 = vmatpush.xpose.msra.mxu3 %v852_v39 }
  0x3a   :  { %340 = vmatpush.xpose.msra.mxu2 %v869_v0 }
  0x3c   :  { %269 = vmatpush.xpose.msra.mxu1 %v268_v25  ;;  %188 = vmatpush.xpose.msra.mxu0 %v876_v4 }
  0x3d   :  { %384 = vmatpush.xpose.msra.mxu3 %v876_v4 }
  0x3e   :  { %343 = vmatpush.xpose.msra.mxu2 %v889_v18 }
  0x40   :  { %275 = vmatpush.xpose.msra.mxu1 %v274_v33  ;;  %190 = vmatpush.xpose.msra.mxu0 %v886_v17 }
  0x41   :  { %386 = vmatpush.xpose.msra.mxu3 %v886_v17 }
  0x42   :  { %346 = vmatpush.xpose.msra.mxu2 %v902_v31 }
  0x44   :  { %281 = vmatpush.xpose.msra.mxu1 %v280_v48  ;;  %192 = vmatpush.xpose.msra.mxu0 %v899_v30 }
  0x45   :  { %388 = vmatpush.xpose.msra.mxu3 %v899_v30 }
  0x46   :  { %349 = vmatpush.xpose.msra.mxu2 %v915_v43 }
  0x48   :  { %287 = vmatpush.xpose.msra.mxu1 %v286_v59  ;;  %194 = vmatpush.xpose.msra.mxu0 %v912_v42 }
  0x49   :  { %390 = vmatpush.xpose.msra.mxu3 %v912_v42 }
  0x4a   :  { %352 = vmatpush.xpose.msra.mxu2 %v295_v58 }
  0x4c   :  { %401 = vmatpush.xpose.msrb.mxu0 %v206_v52  ;;  %293 = vmatpush.xpose.msra.mxu1 %v292_v5  ;;  %v196_v52 = vsub.f32 %v113_v49, %v113_v49 }
  0x4e   :  { %355 = vmatmul.f32.vlgmr.msra.gmra.mxu2 %v196_v52 }
  0x50   :  { %405 = vmatpush.xpose.msrb.mxu0 %v212_v56  ;;  %299 = vmatpush.xpose.msra.mxu1 %v298_v9 }
  0x54   :  { %468 = vmatpush.xpose.msrb.mxu1 %v654_v37  ;;  %409 = vmatpush.xpose.msrb.mxu0 %v218_v60  ;;  %v197_v37 = vand.u32 4294901760, %v196_v52 }
  0x56   :  { %394 = vmatmul.f32.vlgmr.msra.gmra.mxu3 %v197_v37 }
  0x58   :  { %470 = vmatpush.xpose.msrb.mxu1 %v657_v41  ;;  %413 = vmatpush.xpose.msrb.mxu0 %v224_v14  ;;  %v198_v41 = vsub.f32 %v196_v52, %v197_v37 }
  0x5c   :  { %472 = vmatpush.xpose.msrb.mxu1 %v664_v46  ;;  %417 = vmatpush.xpose.msrb.mxu0 %v230_v26  ;;  %v199_v46 = vand.u32 4294901760, %v198_v41 }
  0x5e   :  { %200 = vmatmul.f32.vlgmr.msra.gmra.mxu0 %v199_v46 }
  0x60   :  { %474 = vmatpush.xpose.msrb.mxu1 %v671_v50  ;;  %421 = vmatpush.xpose.msrb.mxu0 %v236_v34  ;;  %v568_v50 = vmov 1.0  }
  0x61   :  { %533 = vmatmul.msk.f32.vlgmr.msra.gmra.mxu1 %vm111_vm0, %v568_v50 }
  0x64   :  { %476 = vmatpush.xpose.msrb.mxu1 %v686_v57  ;;  %425 = vmatpush.xpose.msrb.mxu0 %v242_v55 }
  0x68   :  { %478 = vmatpush.xpose.msrb.mxu1 %v717_v7  ;;  %429 = vmatpush.xpose.msrb.mxu0 %v248_v11 }
  0x6c   :  { %480 = vmatpush.xpose.msrb.mxu1 %v742_v22  ;;  %433 = vmatpush.xpose.msrb.mxu0 %v254_v27 }
  0x70   :  { %482 = vmatpush.xpose.msrb.mxu1 %v772_v40  ;;  %437 = vmatpush.xpose.msrb.mxu0 %v260_v44 }
  0x74   :  { %484 = vmatpush.xpose.msrb.mxu1 %v791_v62  ;;  %441 = vmatpush.xpose.msrb.mxu0 %v266_v3 }
  0x78   :  { %486 = vmatpush.xpose.msrb.mxu1 %v813_v12  ;;  %445 = vmatpush.xpose.msrb.mxu0 %v272_v10 }
  0x7c   :  { %488 = vmatpush.xpose.msrb.mxu1 %v830_v24  ;;  %449 = vmatpush.xpose.msrb.mxu0 %v278_v29 }
  0x80   :  { %490 = vmatpush.xpose.msrb.mxu1 %v852_v39  ;;  %453 = vmatpush.xpose.msrb.mxu0 %v284_v38 }
  0x84   :  { %492 = vmatpush.xpose.msrb.mxu1 %v876_v4  ;;  %457 = vmatpush.xpose.msrb.mxu0 %v290_v54 }
  0x88   :  { %494 = vmatpush.xpose.msrb.mxu1 %v886_v17  ;;  %461 = vmatpush.xpose.msrb.mxu0 %v296_v2 }
  0x8b   :  { %534 = vmatmul.msk.f32.vlgmr.msrb.gmra.mxu0 %vm111_vm0, %v568_v50 }
  0x8c   :  { %496 = vmatpush.xpose.msrb.mxu1 %v899_v30 }
  0x90   :  { %498 = vmatpush.xpose.msrb.mxu1 %v912_v42 }
  0x93   :  { %535 = vmatmul.msk.f32.vlgmr.msrb.gmra.mxu1 %vm111_vm0, %v568_v50 }
  0xd1   :  { %v356_v60 = vpop.f32.mrf.mxu2 }
  0xd9   :  { %v395_v7 = vpop.f32.mrf.mxu3 }
  0xdb   :  { %v201_v56 = vpop.f32.mrf.mxu0 }
  0xde   :  { %v302_v53 = vpop.f32.mrf.mxu1 }
  0xdf   :  { %v303_v57 = vadd.f32 %v302_v53, %v201_v56 }
  0xe1   :  { %v357_v61 = vadd.f32 %v356_v60, %v303_v57 }
  0xe3   :  { %v396_v8 = vadd.f32 %v395_v7, %v357_v61 }
 0x108   :  { %v464_v14 = vpop.f32.mrf.mxu0 }
 0x109   :  { %v465_v22 = vadd.f32 %v464_v14, %v396_v8 }
 0x110   :  { %v501_v23 = vpop.f32.mrf.mxu1 }
 0x111   :  { %v502_v26 = vadd.f32 %v501_v23, %v465_v22 }
 0x113   :  { %539 = vrsqrt.f32 %v502_v26  ;;  %vm511_vm1 = vcmp.eq.f32.partialorder %v502_v26, inf  ;;  %v514_v12 = vand.u32 2147483648, %v502_v26  ;;  %vm513_vm2 = vcmp.eq.f32.partialorder %v502_v26, 0.0 }
 0x119   :  { %v540_v34 = vpop.eup %539 }
 0x11a   :  { %v505_v35 = vmul.f32 %v540_v34, %v502_v26 }
 0x11c   :  { %v506_v40 = vmul.f32 %v540_v34, %v505_v35 }
 0x11e   :  { %v507_v55 = vmul.f32 0.5, %v506_v40 }
 0x120   :  { %v508_v62 = vsub.f32 1.5, %v507_v55 }
 0x122   :  { %v509_v63 = vmul.f32 %v540_v34, %v508_v62 }
 0x124   :  { %v510_v11 = vmul.f32 %v509_v63, %v502_v26 }
 0x126   :  { %v512_v13 = vsel %vm511_vm1, %v502_v26, %v510_v11 }
 0x127   :  { %v515_v24 = vsel %vm513_vm2, %v514_v12, %v512_v13 }
 0x128   :  { %516 = vst [vmem:[#allocation2] sm:$0x1] %v515_v24 }
 0x129   :  { %527 = dma.vmem_to_hbm [thread:$0]  %s523_s25, 16, %s525_s28, [#allocation3]  }
 0x12a   :  { %565 = dma.done.wait [#allocation3], 16  }
 0x12b   :  { %566 = vsyncadd [#allocation3], 4294967280 }
 0x12c   :  { %532 = vsyncpa [#allocation3], 1 }

</bundles_post_ra>
